<compile_context>
chip_gen: v6e
topology: v6e:2x2x1
jax: 0.10.0
libtpu: 0.0.40
codegen_flags: <defaults>
</compile_context>

<pallas_src>
import jax
import jax.numpy as jnp
from jax.experimental import pallas as pl
from jax.experimental.pallas import tpu as pltpu


def _hsigmoid_kernel(x_ref, o_ref):
    x = x_ref[...]
    # relu6(x + 3) / 6.  Python scalars are weak-typed, so bf16 stays bf16.
    o_ref[...] = (jnp.clip(x + 3.0, 0.0, 6.0) / 6.0).astype(o_ref.dtype)


def _cdiv(a, b):
    return -(-a // b)


def _round_up(a, b):
    return _cdiv(a, b) * b


_LANE = 128
# Packed sublane granularity per itemsize (f32: 8, bf16/f16: 16).
_SUBLANES = {4: 8, 2: 16}


def _pick_width(n, sub):
    """Factor n == rows * width with a lane-friendly width (reshape is metadata-only)."""
    lane_widths = [w for w in (2048, 1024, 512, 256, 128) if n % w == 0]
    if lane_widths:
        roomy = [w for w in lane_widths if n // w >= 4 * sub]
        return roomy[0] if roomy else lane_widths[0]
    # Non-128-divisible sizes (rare for conv feature maps): largest divisor of
    # n <= 4096.  Zero extra HBM copies; trailing lanes of each row are simply
    # masked (vst.msk) since width equals the full array dim.
    w = min(n, 4096)
    while n % w:
        w -= 1
    return w


def _pick_block_rows(rows, width, itemsize, sub,
                     target_block_bytes, min_block_bytes, min_steps):
    """Rows per block: multi-MiB, sublane-aligned, >= min_steps pipeline stages
    when the tensor is big enough, preferring uniform blocks / even grids."""
    # VMEM footprint of one block row (lane dim padded to 128).
    row_bytes = _round_up(width, _LANE) * itemsize

    def down(r):
        return max(sub, (r // sub) * sub)

    max_br = down(max(sub, target_block_bytes // row_bytes))
    min_br = min(down(max(sub, min_block_bytes // row_bytes)), max_br)

    if rows <= max(2 * sub, min_br):
        return rows                          # tiny tensor: one full-extent block

    br = min(max_br, down(rows))
    if _cdiv(rows, br) < min_steps:
        # Deepen the pipeline (DMA overlap + both v7x TCs busy), but keep the
        # blocks >= ~min_block_bytes so the ~0.35 us/step overhead stays small.
        br = max(min_br, down(max(sub, rows // min_steps)))

    # Snap br (within ~25%) toward uniform blocks (no masked tail, balanced
    # DMAs) and an even grid (v7x has 2 TensorCores sharing a "parallel" axis).
    best, best_score = br, (rows % br == 0, _cdiv(rows, br) % 2 == 0, br)
    lo = max(sub, down(int(br * 0.75)))
    for cand in range(lo, br + 1, sub):
        score = (rows % cand == 0, _cdiv(rows, cand) % 2 == 0, cand)
        if score > best_score:
            best, best_score = cand, score
    return best


def hsigmoid(x, *, target_block_bytes=4 << 20, min_block_bytes=512 << 10,
             min_steps=8):
    """Elementwise hard-sigmoid, matching F.relu6(x + 3.0) / 6.0."""
    if not jnp.issubdtype(x.dtype, jnp.floating):
        raise TypeError(f"hsigmoid expects a floating dtype, got {x.dtype}")

    orig_shape = x.shape
    dtype = x.dtype
    n = x.size
    if n == 0:
        return x

    itemsize = jnp.dtype(dtype).itemsize
    sub = _SUBLANES.get(itemsize, 8)

    width = _pick_width(n, sub)
    rows = n // width
    x2d = x.reshape(rows, width)              # metadata-only, no HBM copy

    br = _pick_block_rows(rows, width, itemsize, sub,
                          target_block_bytes, min_block_bytes, min_steps)
    grid = (_cdiv(rows, br),)                 # partial tail block auto-masked

    # 2 input + 2 output double-buffers (+ slack).  Explicit limit documents
    # the 4x multiplier and keeps 4 MiB blocks legal on v5e's 16 MiB default.
    block_vmem = _round_up(br, sub) * _round_up(width, _LANE) * itemsize
    vmem_limit = int(min(32 << 20, max(8 << 20, 6 * block_vmem)))

    cost = pl.CostEstimate(
        flops=4 * n,
        transcendentals=0,
        bytes_accessed=2 * n * itemsize,
    )

    out2d = pl.pallas_call(
        _hsigmoid_kernel,
        out_shape=jax.ShapeDtypeStruct((rows, width), dtype),
        grid_spec=pltpu.PrefetchScalarGridSpec(
            num_scalar_prefetch=0,
            grid=grid,
            in_specs=[pl.BlockSpec((br, width), lambda i: (i, 0))],
            out_specs=pl.BlockSpec((br, width), lambda i: (i, 0)),
        ),
        compiler_params=pltpu.CompilerParams(
            dimension_semantics=("parallel",),
            vmem_limit_bytes=vmem_limit,
        ),
        cost_estimate=cost,
    )(x2d)

    return out2d.reshape(orig_shape)


def _ref(x):
    return jnp.clip(x + 3.0, 0.0, 6.0) / 6.0


if __name__ == "__main__":
    key = jax.random.PRNGKey(0)
    keys = jax.random.split(key, 4)

    # NCHW input, matching the PyTorch module's convention (small shape).
    x = jax.random.normal(keys[0], (2, 4, 16, 16), dtype=jnp.float32) * 4.0
    out = hsigmoid(x)
    jax.block_until_ready(out)
    assert out.shape == x.shape and out.dtype == x.dtype
    assert jnp.max(jnp.abs(out - _ref(x))) < 1e-6

    # Odd-sized input: exercises the zero-copy non-128-divisible path.
    x_odd = jax.random.normal(keys[1], (3, 5, 7), dtype=jnp.float32) * 4.0
    out_odd = hsigmoid(x_odd)
    jax.block_until_ready(out_odd)
    assert out_odd.shape == x_odd.shape
    assert jnp.max(jnp.abs(out_odd - _ref(x_odd))) < 1e-6

    # bf16 input: dtype-aware sublane packing, stays in bf16.
    x_bf = x.astype(jnp.bfloat16)
    out_bf = hsigmoid(x_bf)
    jax.block_until_ready(out_bf)
    assert out_bf.dtype == jnp.bfloat16
    assert jnp.max(jnp.abs(out_bf.astype(jnp.float32)
                           - _ref(x_bf).astype(jnp.float32))) < 1e-2

    # Multi-block input: exercises the grid + masked partial tail block.
    x_big = jax.random.normal(keys[2], (2, 32, 56, 56), dtype=jnp.float32) * 4.0
    out_big = hsigmoid(x_big)
    jax.block_until_ready(out_big)
    assert out_big.shape == x_big.shape
    assert jnp.max(jnp.abs(out_big - _ref(x_big))) < 1e-6

    # TODO(synk): the PyTorch `inplace=True` flag has no JAX equivalent (arrays
    # are immutable); forward semantics are unchanged.
    print("KERNEL_OK")
</pallas_src>

<mosaic_0001>
module attributes {stable_mosaic.version = 11 : i64} {
  func.func @_hsigmoid_kernel(%arg0: i32, %arg1: memref<1x2048xf32, #tpu.memory_space<vmem>>, %arg2: memref<1x2048xf32, #tpu.memory_space<vmem>>) attributes {dimension_semantics = [#tpu.dimension_semantics<parallel>], iteration_bounds = array<i64: 1>, scalar_prefetch = 0 : i64, scratch_operands = 0 : i64, tpu.core_type = #tpu.core_type<tc>, window_params = [{transform_indices = @transform_0, window_bounds = array<i64: 1, 2048>}, {transform_indices = @transform_1, window_bounds = array<i64: 1, 2048>}]} {
    %c0 = arith.constant 0 : index
    %c0_0 = arith.constant 0 : index
    %0 = vector.load %arg1[%c0, %c0_0] : memref<1x2048xf32, #tpu.memory_space<vmem>>, vector<1x2048xf32>
    %cst = arith.constant 3.000000e+00 : f32
    %1 = vector.broadcast %cst : f32 to vector<1x2048xf32>
    %2 = arith.addf %0, %1 : vector<1x2048xf32>
    %cst_1 = arith.constant 0.000000e+00 : f32
    %cst_2 = arith.constant 6.000000e+00 : f32
    %3 = vector.broadcast %cst_1 : f32 to vector<1x2048xf32>
    %4 = arith.maximumf %3, %2 : vector<1x2048xf32>
    %5 = vector.broadcast %cst_2 : f32 to vector<1x2048xf32>
    %6 = arith.minimumf %5, %4 : vector<1x2048xf32>
    %cst_3 = arith.constant 6.000000e+00 : f32
    %7 = vector.broadcast %cst_3 : f32 to vector<1x2048xf32>
    %8 = arith.divf %6, %7 : vector<1x2048xf32>
    %c0_4 = arith.constant 0 : index
    %c0_5 = arith.constant 0 : index
    %9 = vector.load %arg2[%c0_4, %c0_5] : memref<1x2048xf32, #tpu.memory_space<vmem>>, vector<1x2048xf32>
    tpu.vector_store %arg2[%c0_4, %c0_5], %8 {strides = array<i32>} : memref<1x2048xf32, #tpu.memory_space<vmem>>, vector<1x2048xf32>,
    return
  }
  func.func @transform_0(%arg0: i32) -> (i32, i32) {
    %c0_i32 = arith.constant 0 : i32
    %c0_i32_0 = arith.constant 0 : i32
    return %arg0, %c0_i32 : i32, i32
  }
  func.func @transform_1(%arg0: i32) -> (i32, i32) {
    %c0_i32 = arith.constant 0 : i32
    %c0_i32_0 = arith.constant 0 : i32
    return %arg0, %c0_i32 : i32, i32
  }
}

</mosaic_0001>

<bundles_post_ra>
// kernel: tpu_custom_call.1
= control target key start
LH: loop header
LB: loop body
LE: loop exit
PB: predicated region body
PF: predicated region fallthrough
CT: control target
= control target key end

     0   :  { %6 = vsyncpa [#allocation3], 0  ;;  %s113_s0 = inlined_call_operand.hbm [shape: f32[1,2048], index: 0, kind: input, shape index: {}]   ;;  %s114_s1 = inlined_call_operand.hbm [shape: f32[1,2048], index: 1, kind: output, shape index: {}]  }
   0x1   :  { %7 = vsyncpa [#allocation4], 0  ;;  %s95_s6 = smov [#allocation2]  }
   0x2   :  { %s14_s7 = sshll.u32 %s95_s6, 4  ;;  %s15_s7 = int_to_ptr.vmem [resolvable:$true] %s14_s7 }
   0x3   :  { %s59_s8 = scalar_lea.vmem %s15_s7, 256  ;;  %p64_p1 = scmp.lt.s32.totalorder %s15_s7, %s15_s7 }
   0x4   :  { %p60_p0 = scmp.ne.s32.totalorder %s15_s7, %s59_s8  ;;  %p65_p2 = scmp.lt.s32.totalorder %s59_s8, %s59_s8 }
   0x6   :  { %p66_p3 = por %p65_p2, %p64_p1 }
   0x8   :  { %p67_p4 = pnand %p66_p3, %p60_p0 }
   0xa   :  { %70 = shalt.err (!%p67_p4)
}
   0xb   :  { %17 = dma.hbm_to_vmem [thread:$0]  %s113_s0, 256, %s15_s7, [#allocation3]  }
   0xc   :  { %91 = dma.done.wait [#allocation3], 256  }
   0xd   :  { %92 = vsyncadd [#allocation3], 4294967040  ;;  %v21_v0 = vld [vmem:[#allocation2] sm:$0xff]  ;;  %v22_v1 = vld [vmem:[#allocation2 + $0x8] sm:$0xff]  ;;  %s96_s11 = smov [#allocation5]  }
   0xe   :  { %v23_v2 = vadd.f32 3.0, %v21_v0  ;;  %v24_v3 = vadd.f32 3.0, %v22_v1  ;;  %s40_s12 = sshll.u32 %s96_s11, 4  ;;  %s41_s12 = int_to_ptr.vmem [resolvable:$true] %s40_s12 }
   0xf   :  { %s71_s13 = scalar_lea.vmem %s41_s12, 256  ;;  %p76_p6 = scmp.lt.s32.totalorder %s41_s12, %s41_s12 }
  0x10   :  { %v25_v4 = vmax.f32 %v23_v2, 0.0  ;;  %v26_v5 = vmax.f32 %v24_v3, 0.0  ;;  %p72_p5 = scmp.ne.s32.totalorder %s41_s12, %s71_s13  ;;  %p77_p7 = scmp.lt.s32.totalorder %s71_s13, %s71_s13 }
  0x12   :  { %v27_v6 = vmin.f32 %v25_v4, 6.0  ;;  %v28_v7 = vmin.f32 %v26_v5, 6.0  ;;  %p78_p8 = por %p77_p7, %p76_p6 }
  0x14   :  { %v30_v8 = vmul.f32 0.16666667, %v27_v6  ;;  %v31_v9 = vmul.f32 0.16666667, %v28_v7  ;;  %p79_p9 = pnand %p78_p8, %p72_p5 }
  0x16   :  { %32 = vst [vmem:[#allocation5] sm:$0xff] %v30_v8  ;;  %33 = vst [vmem:[#allocation5 + $0x8] sm:$0xff] %v31_v9 }
  0x17   :  { %82 = shalt.err (!%p79_p9)
}
  0x18   :  { %43 = dma.vmem_to_hbm [thread:$0]  %s41_s12, 256, %s114_s1, [#allocation4]  }
  0x19   :  { %93 = dma.done.wait [#allocation4], 256  }
  0x1a   :  { %94 = vsyncadd [#allocation4], 4294967040 }
  0x1b   :  { %47 = vsyncpa [#allocation3], 1 }
  0x1c   :  { %48 = vsyncpa [#allocation4], 1 }

</bundles_post_ra>
